<compile_context>
chip_gen: v6e
topology: v6e:2x2x1
jax: 0.10.0
libtpu: 0.0.40
codegen_flags: <defaults>
</compile_context>

<pallas_src>
import jax
import jax.numpy as jnp
import numpy as np
from jax.experimental import pallas as pl
from jax.experimental.pallas import tpu as pltpu

NUM_PARAMS = 10
DIM = 10


def _fold_weights(params):
    """W_total = w9 @ w8 @ ... @ w0 with w_i = params[i//2] + params[i]."""
    ws = [params[i // 2] + params[i] for i in range(NUM_PARAMS)]
    # Log-depth tree; later factors multiply on the left. x-independent, so it
    # runs once per forward call (hoisted out of the per-tile grid body).
    while len(ws) > 1:
        nxt = [
            jnp.dot(
                ws[j + 1],
                ws[j],
                precision=jax.lax.Precision.HIGHEST,
                preferred_element_type=jnp.float32,
            )
            for j in range(0, len(ws) - 1, 2)
        ]
        if len(ws) % 2 == 1:
            nxt.append(ws[-1])  # leftover is the latest (leftmost) factor
        ws = nxt
    return ws[0]  # (10, 10)


def _matmul_tile_kernel(w_ref, x_ref, out_ref):
    # w_ref: (10, 10) VMEM, constant across the grid; x/out: (10, tile_n).
    out_ref[...] = jnp.dot(
        w_ref[...].astype(jnp.float32),
        x_ref[...].astype(jnp.float32),
        preferred_element_type=jnp.float32,
    ).astype(out_ref.dtype)


def _choose_tile_n(n):
    # Wide tiles (512-2048 lanes) sit near the HBM-streaming roofline; keep
    # >= 2 grid steps when possible so v7x can split the "parallel" axis
    # across both TensorCores.
    for cand in (2048, 1024, 512, 256):
        if n % cand == 0 and n // cand >= 2:
            return cand
    return n if n <= 2048 else 128


@jax.jit
def parameter_module_forward(params, x):
    """params: (10, 10, 10) f32, x: (10, N) f32 -> (10, N) f32."""
    k, n = x.shape
    assert params.shape == (NUM_PARAMS, DIM, DIM) and k == DIM
    assert n % 128 == 0, "N must be lane-dense (multiple of 128)"

    # Hoisted x-independent fold (runs once, not per grid step).
    w_total = _fold_weights(params.astype(jnp.float32))

    tile_n = _choose_tile_n(n)
    assert n % tile_n == 0
    grid = (n // tile_n,)

    return pl.pallas_call(
        _matmul_tile_kernel,
        out_shape=jax.ShapeDtypeStruct((k, n), x.dtype),
        grid=grid,
        in_specs=[
            # W_total resident each step (tiny: 400 B).
            pl.BlockSpec((DIM, DIM), lambda j: (0, 0)),
            # Wide lane-dense x tiles, parallel over N.
            pl.BlockSpec((DIM, tile_n), lambda j: (0, j)),
        ],
        out_specs=pl.BlockSpec((DIM, tile_n), lambda j: (0, j)),
        compiler_params=pltpu.CompilerParams(
            dimension_semantics=("parallel",)),
    )(w_total, x)


def reference_forward_np(params, x):
    # Exact (float64, host) reference mirroring the PyTorch loop literally.
    p = np.asarray(params, dtype=np.float64)
    y = np.asarray(x, dtype=np.float64)
    for i in range(NUM_PARAMS):
        y = p[i // 2] @ y + p[i] @ y
    return y


if __name__ == "__main__":
    key = jax.random.PRNGKey(0)

    # Parameters exactly as in __init__: 10 x ones(10, 10).
    params = jnp.ones((NUM_PARAMS, DIM, DIM), dtype=jnp.float32)
    # otherparam = nn.Parameter(torch.Tensor(5)) is unused in forward.
    otherparam = jnp.zeros((5,), dtype=jnp.float32)  # unused

    # x must have leading dim 10 for the mm chain; N = 1024 gives two
    # lane-dense 512-wide tiles (grid of 2 -> both v7x TensorCores busy).
    n = 1024
    x = jax.random.normal(key, (DIM, n), dtype=jnp.float32)

    out = jax.block_until_ready(parameter_module_forward(params, x))

    ref = reference_forward_np(params, x)
    assert out.shape == (DIM, n) and ref.shape == (DIM, n)

    # Activations grow to ~1e12; the MXU's reduced-precision (bf16) multiply
    # passes for f32 inputs give per-element relative error up to a few 1e-3,
    # and columns whose sum nearly cancels have poor pointwise relative error,
    # so compare error normalized by the overall output magnitude.
    err = float(
        np.max(np.abs(np.asarray(out, dtype=np.float64) - ref))
        / np.max(np.abs(ref))
    )
    assert err < 2e-2, f"normalized max err {err}"

    print("KERNEL_OK")
</pallas_src>

<mosaic_0001>
module attributes {stable_mosaic.version = 11 : i64} {
  func.func @_matmul_tile_kernel(%arg0: i32, %arg1: memref<10x10xf32, #tpu.memory_space<vmem>>, %arg2: memref<10x512xf32, #tpu.memory_space<vmem>>, %arg3: memref<10x512xf32, #tpu.memory_space<vmem>>) attributes {dimension_semantics = [#tpu.dimension_semantics<parallel>], iteration_bounds = array<i64: 2>, scalar_prefetch = 0 : i64, scratch_operands = 0 : i64, tpu.core_type = #tpu.core_type<tc>, window_params = [{pipeline_mode = #tpu.pipeline_mode<synchronous>, transform_indices = @transform_0, window_bounds = array<i64: 10, 10>}, {transform_indices = @transform_1, window_bounds = array<i64: 10, 512>}, {transform_indices = @transform_2, window_bounds = array<i64: 10, 512>}]} {
    %c0 = arith.constant 0 : index
    %c0_0 = arith.constant 0 : index
    %0 = vector.load %arg1[%c0, %c0_0] : memref<10x10xf32, #tpu.memory_space<vmem>>, vector<10x10xf32>
    %c0_1 = arith.constant 0 : index
    %c0_2 = arith.constant 0 : index
    %1 = vector.load %arg2[%c0_1, %c0_2] : memref<10x512xf32, #tpu.memory_space<vmem>>, vector<10x512xf32>
    %cst = arith.constant dense<0.000000e+00> : vector<10x512xf32>
    %2 = tpu.matmul %0, %1, %cst {dimension_numbers = #tpu.dot_dimension_numbers<[1], [0], [0], [1], [0, 0, 1, 1], [], []>} : vector<10x10xf32>, vector<10x512xf32>, vector<10x512xf32> -> vector<10x512xf32>
    %c0_3 = arith.constant 0 : index
    %c0_4 = arith.constant 0 : index
    %3 = vector.load %arg3[%c0_3, %c0_4] : memref<10x512xf32, #tpu.memory_space<vmem>>, vector<10x512xf32>
    tpu.vector_store %arg3[%c0_3, %c0_4], %2 {strides = array<i32>} : memref<10x512xf32, #tpu.memory_space<vmem>>, vector<10x512xf32>,
    return
  }
  func.func @transform_0(%arg0: i32) -> (i32, i32) {
    %c0_i32 = arith.constant 0 : i32
    %c0_i32_0 = arith.constant 0 : i32
    %c0_i32_1 = arith.constant 0 : i32
    return %c0_i32, %c0_i32_0 : i32, i32
  }
  func.func @transform_1(%arg0: i32) -> (i32, i32) {
    %c0_i32 = arith.constant 0 : i32
    %c0_i32_0 = arith.constant 0 : i32
    return %c0_i32, %arg0 : i32, i32
  }
  func.func @transform_2(%arg0: i32) -> (i32, i32) {
    %c0_i32 = arith.constant 0 : i32
    %c0_i32_0 = arith.constant 0 : i32
    return %c0_i32, %arg0 : i32, i32
  }
}

</mosaic_0001>

<bundles_post_ra>
// kernel: parameter_module_forward.1
= control target key start
LH: loop header
LB: loop body
LE: loop exit
PB: predicated region body
PF: predicated region fallthrough
CT: control target
= control target key end

     0   :  { %7 = vsyncpa [#allocation4], 0  ;;  %s722_s0 = inlined_call_operand.vmem [shape: f32[10,10], index: 0, kind: input, shape index: {}]   ;;  %s723_s1 = inlined_call_operand.vmem [shape: f32[10,1024], index: 1, kind: input, shape index: {}]   ;;  %s724_s2 = inlined_call_operand.hbm [shape: f32[10,1024], index: 2, kind: output, shape index: {}]  }
   0x1   :  { %9 = vsyncpa [#allocation4 + $0x1], 0  ;;  %s601_s9 = smov 0   ;;  %s603_s10 = smov 0  }
   0x2   :  { %s605_s11 = smov 0   ;;  %s607_s12 = smov 0  }
   0x3 LB: > { %s451_s13 = sadd.s32 4294967295, %s579_s12   ;;  %s452_s14 = sadd.s32 4294967294, %s579_s12   ;;  %s579_s12 = sphi %s607_s12, %s730_s12   ;;  %s575_s11 = sphi %s605_s11, %s729_s11   ;;  %s571_s10 = sphi %s603_s10, %s728_s10   ;;  %s567_s9 = sphi %s601_s9, %s727_s9  }
   0x4   : > { %s624_s15 = sadd.s32 1, %s579_s12   ;;  %s43_s16 = sadd.s32 1, %s575_s11 }
   0x5   : > { %s40_s17 = ssub.s32 %s579_s12, %s624_s15  ;;  %p50_p0 = scmp.ne.s32.totalorder %s575_s11, %s571_s10 }
   0x6   : > { %p41_p1 = scmp.eq.s32.totalorder %s40_s17, 0  ;;  %p51_p2 = scmp.eq.s32.totalorder %s579_s12, 0 }
   0x7   : > { %p80_p3 = scmp.eq.s32.totalorder %s451_s13, 1  ;;  %p85_p4 = scmp.ne.s32.totalorder %s571_s10, %s567_s9 }
   0x8   : > { %s637_s18 = scalar_select %p41_p1, %s575_s11, %s43_s16  }
   0x9   : > { %p52_p5 = por %p51_p2, %p50_p0  ;;  %p639_p6 = por %p80_p3, %p50_p0 }
   0xa   : > { %p86_p7 = scmp.eq.s32.totalorder %s452_s14, 1  ;;  %p454_p9 = scmp.ge.s32.totalorder %s579_s12, 2 }
   0xc   : > { %p643_p8 = por %p86_p7, %p85_p4  ;;  %105 = sbr.rel (%p454_p9) target bundleno = 25 (0x19), region = 20 }
  0x11   : > { %108 = sbr.rel (!%p52_p5) target bundleno = 25 (0x19), region = 24  ;;  %s110_s21 = sand.u32 (%p52_p5), 1, %s575_s11  }
  0x12   : > { %s474_s22 = sshll.u32 (%p52_p5), %s579_s12, 5  ;;  %s455_s23 = sshll.u32 (%p52_p5), %s110_s21, 6 }
  0x13   : > { %s115_s26 = scalar_lea.vmem (%p52_p5), %s723_s1, %s474_s22  ;;  %s112_s27 = scalar_lea.vmem (%p52_p5), [#allocation2], %s455_s23 }
  0x14   : > { %v128_v0 = vld [vmem:[%s115_s26] sm:$0xff] (%p52_p5)  ;;  %v130_v1 = vld [vmem:[%s115_s26 + $0x8] sm:$0xff] (%p52_p5)  ;;  %v132_v2 = vld [vmem:[%s115_s26 + $0x10] sm:$0xff] (%p52_p5) }
  0x15   : > { %129 = vst [vmem:[%s112_s27] sm:$0xff] (%p52_p5), %v128_v0  ;;  %131 = vst [vmem:[%s112_s27 + $0x8] sm:$0xff] (%p52_p5), %v130_v1  ;;  %v134_v3 = vld [vmem:[%s115_s26 + $0x18] sm:$0xff] (%p52_p5)  ;;  %v136_v4 = vld [vmem:[%s115_s26 + $0x40] sm:$0xff] (%p52_p5) }
  0x16   : > { %133 = vst [vmem:[%s112_s27 + $0x10] sm:$0xff] %v132_v2  ;;  %v138_v5 = vld [vmem:[%s115_s26 + $0x48] sm:$0xff]  ;;  %135 = vst [vmem:[%s112_s27 + $0x18] sm:$0xff] %v134_v3  ;;  %v140_v6 = vld [vmem:[%s115_s26 + $0x50] sm:$0xff] }
  0x17   : > { %137 = vst [vmem:[%s112_s27 + $0x20] sm:$0xff] %v136_v4  ;;  %139 = vst [vmem:[%s112_s27 + $0x28] sm:$0xff] %v138_v5  ;;  %v142_v7 = vld [vmem:[%s115_s26 + $0x58] sm:$0xff] }
  0x18   : > { %141 = vst [vmem:[%s112_s27 + $0x30] sm:$0xff] %v140_v6  ;;  %143 = vst [vmem:[%s112_s27 + $0x38] sm:$0xff] %v142_v7 }
  0x19 PF: > { %p458_p10 = scmp.ge.s32.totalorder %s579_s12, 1  ;;  %p148_p11 = scmp.lt.s32.totalorder %s579_s12, 3 }
  0x1b   : > { %p149_p12 = pnand %p458_p10, %p148_p11 }
  0x1c   : > { %s155_s28 = sand.u32 (!%p149_p12), 1, %s571_s10   ;;  %s475_s14 = sshll.u32 (!%p149_p12), %s451_s13, 9 }
  0x1d   : > { %152 = sbr.rel (%p149_p12) target bundleno = 254 (0xfe), region = 47  ;;  %s660_s29 = sshll.u32 (!%p149_p12), %s155_s28, 6 }
  0x1e   : > { %s157_s30 = scalar_lea.vmem (!%p149_p12), [#allocation2], %s660_s29  ;;  %s175_s7 = scalar_lea.vmem (!%p149_p12), [#allocation3], %s660_s29 }
  0x1f   : > { %s384_s8 = sshll.u32 (!%p149_p12), %s175_s7, 4  ;;  %s677_s21 = scalar_lea.hbm (!%p149_p12), %s724_s2, %s475_s14  ;;  %s672_s8 = int_to_ptr.vmem [resolvable:$true] %s384_s8 }
  0x20   : > { %s681_s13 = scalar_lea.sflag (!%p149_p12), [#allocation4], %s155_s28  ;;  %s519_s22 = scalar_lea.vmem (!%p149_p12), %s672_s8, 1024 }
  0x21   : > { %p520_p13 = scmp.ne.s32.totalorder (!%p149_p12), %s672_s8, %s519_s22  ;;  %s582_s23 = smov (!%p149_p12), [#allocation3]  }
  0x22   : > { %vm195_vm0 = vcmask 1041408   ;;  %v581_v8 = vmov 0.0   ;;  %v185_v9 = vld [vmem:[%s157_s30 + $0x28] sm:$0x3]  ;;  %v187_v10 = vld [vmem:[%s157_s30 + $0x38] sm:$0x3] }
  0x23   : > { %272 = vmatprep.mubr.f32.mxu0 %v581_v8  ;;  %349 = vmatprep.mubr.f32.mxu1 %v581_v8  ;;  %v181_v11 = vld [vmem:[%s157_s30 + $0x8] sm:$0xff]  ;;  %v184_v12 = vld [vmem:[%s157_s30 + $0x20] sm:$0x3]  ;;  %v186_v13 = vld [vmem:[%s157_s30 + $0x30] sm:$0x3]  ;;  %vm188_vm1 = vcmask 80896   ;;  %p521_p0 = pnand %p520_p13, %p639_p6 }
  0x24   : > { %461 = vmatprep.subr.msk.mxu0 %vm195_vm0, %v185_v9  ;;  %465 = vmatprep.subr.msk.mxu1 %vm195_vm0, %v187_v10  ;;  %v183_v14 = vld [vmem:[%s157_s30 + $0x18] sm:$0xff]  ;;  %v180_v15 = vld [vmem:[%s157_s30] sm:$0xff]  ;;  %v182_v16 = vld [vmem:[%s157_s30 + $0x10] sm:$0xff]  ;;  %s523_s24 = sshll.u32 %s582_s23, 4  ;;  %s524_s24 = int_to_ptr.vmem [resolvable:$false] %s523_s24 }
  0x25   : > { %462 = vmatpush1.msk.msra.mxu0 %vm195_vm0, %v184_v12  ;;  %466 = vmatpush1.msk.msra.mxu1 %vm195_vm0, %v186_v13  ;;  %v178_v17 = vld [vmem:[%s722_s0] sm:$0xff]  ;;  %v179_v18 = vld [vmem:[%s722_s0 + $0x8] sm:$0x3]  ;;  %p522_p1 = pneg %p521_p0  ;;  %s525_s25 = scalar_lea.vmem %s524_s24, 2048 }
  0x26   : > { %238 = vmatprep.subr.mxu0 %v181_v11  ;;  %315 = vmatprep.subr.mxu1 %v183_v14  ;;  %p526_p2 = scmp.lt.s32.totalorder %s672_s8, %s524_s24  ;;  %p527_p3 = scmp.lt.s32.totalorder %s525_s25, %s519_s22 }
  0x27   : > { %239 = vmatpush1.msra.mxu0 %v180_v15  ;;  %316 = vmatpush1.msra.mxu1 %v182_v16 }
  0x28   : > { %463 = vmatmul.mubr.msk.f32.vlgmr.msra.gmra.mxu0 %vm188_vm1, %v178_v17  ;;  %467 = vmatmul.mubr.msk.f32.vlgmr.msra.gmra.mxu1 %vm188_vm1, %v178_v17  ;;  %p528_p4 = por %p527_p3, %p526_p2 }
  0x29   : > { %278 = vmatprep.mubr.f32.mxu0 %v581_v8  ;;  %355 = vmatprep.mubr.f32.mxu1 %v581_v8 }
  0x2a   : > { %p529_p5 = pnand %p528_p4, %p522_p1 }
  0x2c   : > { %464 = vmatmul.mubr.msk.f32.gmra.mxu0 %vm188_vm1, %v179_v18  ;;  %468 = vmatmul.mubr.msk.f32.gmra.mxu1 %vm188_vm1, %v179_v18 }
  0xe8   : > { %v274_v19 = vpop.f32.mrf.mxu0  ;;  %v351_v20 = vpop.f32.mrf.mxu1 }
  0xe9   : > { %362 = vst [vmem:[%s175_s7] sm:$0xff] %v274_v19  ;;  %364 = vst [vmem:[%s175_s7 + $0x10] sm:$0xff] %v351_v20 }
  0xea   : > { %v276_v21 = vpop.f32.mrf.mxu0  ;;  %v353_v22 = vpop.f32.mrf.mxu1 }
  0xeb   : > { %363 = vst [vmem:[%s175_s7 + $0x8] sm:$0xff] %v276_v21  ;;  %365 = vst [vmem:[%s175_s7 + $0x18] sm:$0xff] %v353_v22 }
  0xec   : > { %v280_v23 = vpop.f32.mrf.mxu0  ;;  %v357_v24 = vpop.f32.mrf.mxu1 }
  0xed   : > { %366 = vst [vmem:[%s175_s7 + $0x20] sm:$0x3] %v280_v23  ;;  %368 = vst [vmem:[%s175_s7 + $0x30] sm:$0x3] %v357_v24 }
  0xee   : > { %v282_v25 = vpop.f32.mrf.mxu0  ;;  %v359_v26 = vpop.f32.mrf.mxu1 }
  0xef   : > { %367 = vst [vmem:[%s175_s7 + $0x28] sm:$0x3] %v282_v25  ;;  %369 = vst [vmem:[%s175_s7 + $0x38] sm:$0x3] %v359_v26 }
  0xf0   : > { %532 = shalt.err (!%p529_p5)
}
  0xf1   : > { %s533_s26 = scalar_lea.hbm %s677_s21, 1024  ;;  %s537_s29 = scalar_lea.hbm %s724_s2, 2048 }
  0xf2   : > { %p534_p7 = scmp.ne.s32.totalorder %s677_s21, %s533_s26  ;;  %p538_p12 = scmp.lt.s32.totalorder %s677_s21, %s724_s2 }
  0xf3   : > { %p539_p13 = scmp.lt.s32.totalorder %s537_s29, %s533_s26 }
  0xf4   : > { %p535_p10 = pnand %p534_p7, %p639_p6 }
  0xf5   : > { %p540_p0 = por %p539_p13, %p538_p12 }
  0xf6   : > { %p536_p11 = pneg %p535_p10 }
  0xf8   : > { %p541_p1 = pnand %p540_p0, %p536_p11 }
  0xfa   : > { %544 = shalt.err (!%p541_p1)
}
  0xfb   : > { %s583_s4 = smov 512   ;;  %s584_s5 = smov 1024  }
  0xfc   : > { %s585_s6 = smov 32  }
  0xfd   : > { %476 = dma.vmem_to_hbm [thread:$0]  (%p639_p6), %s672_s8, 1024, %s677_s21, %s681_s13, %s583_s4, %s584_s5, %s585_s6  }
  0xfe PF: > { %s399_s7 = sand.u32 1, %s567_s9   ;;  %p479_p2 = pnand %p454_p9, %p643_p8 }
  0xff   : > { %s400_s14 = scalar_lea.sflag [#allocation4], %s399_s7 }
 0x100   : > { %p480_p3 = pneg %p479_p2 }
 0x102   : > { %562 = dma.done.wait (%p480_p3), %s400_s14, 1024  }
 0x103   : > { %564 = vsyncadd (%p480_p3), %s400_s14, 4294966272  ;;  %p12_p4 = scmp.ge.s32.totalorder %s624_s15, 4   ;;  %s727_s9 = smov %s571_s10 }
 0x104   : > { %s728_s10 = smov %s575_s11  ;;  %s729_s11 = smov %s637_s18 }
 0x105   : > { %s730_s12 = smov %s624_s15  ;;  %14 = sbr.rel (!%p12_p4) target bundleno = 3 (0x3), region = 91 }
 0x10a   :  { %405 = vsyncpa [#allocation4], 1 }
 0x10b   :  { %407 = vsyncpa [#allocation4 + $0x1], 1 }

</bundles_post_ra>
